<compile_context>
chip_gen: v6e
topology: v6e:2x2x1
jax: 0.10.0
libtpu: 0.0.40
codegen_flags: <defaults>
</compile_context>

<pallas_src>
import functools

import jax
import jax.numpy as jnp
from jax.experimental import pallas as pl
from jax.experimental.pallas import tpu as pltpu

EPS_PPO = 1e-5
_LANE = 128


def _round_up(x, m):
    return pl.cdiv(x, m) * m


@functools.lru_cache(maxsize=1)
def _vmem_limit():
    """Generation-aware scoped-VMEM limit (~half of physical VMEM)."""
    try:
        cap = getattr(pltpu.get_tpu_info(), "vmem_capacity_bytes", None)
    except Exception:  # interpret mode / old runtime
        cap = None
    if not cap:
        return 32 * 1024 * 1024
    return int(max(32 * 1024 * 1024, min(96 * 1024 * 1024, cap // 2)))


# -----------------------------------------------------------------------------
# Kernel A: advantages = returns - value_preds, normalized by mean / std(N-1).
# Two gridded, pipelined passes over lane-dense [rows, 128] slabs:
#   pass 1: single-pass sum / sum-of-squares -> broadcast mean & 1/(std+eps)
#   pass 2: (adv - mean) * inv, "parallel" over row tiles.
# Padded entries are exactly zero, so the sums need no mask.
# -----------------------------------------------------------------------------
def _adv_stats_kernel(r_ref, v_ref, mean_ref, inv_ref, sum_acc, sq_acc, *,
                      num_valid):
    i = pl.program_id(0)

    @pl.when(i == 0)
    def _init():
        sum_acc[...] = jnp.zeros_like(sum_acc)
        sq_acc[...] = jnp.zeros_like(sq_acc)

    adv = r_ref[...] - v_ref[...]                            # [TR, 128] f32
    sum_acc[...] += jnp.sum(adv, axis=0, keepdims=True)      # per-lane partials
    sq_acc[...] += jnp.sum(adv * adv, axis=0, keepdims=True)

    @pl.when(i == pl.num_programs(0) - 1)
    def _finalize():
        n = float(num_valid)
        denom = float(max(num_valid - 1, 1))                 # torch .std() unbiased
        s = jnp.sum(sum_acc[...], keepdims=True)             # (1, 1)
        sq = jnp.sum(sq_acc[...], keepdims=True)
        mean = s / n
        var = jnp.maximum((sq - n * mean * mean) / denom, 0.0)
        inv = 1.0 / (jnp.sqrt(var) + EPS_PPO)
        mean_ref[...] = jnp.broadcast_to(mean, mean_ref.shape)
        inv_ref[...] = jnp.broadcast_to(inv, inv_ref.shape)


def _adv_norm_kernel(r_ref, v_ref, mean_ref, inv_ref, out_ref):
    out_ref[...] = (r_ref[...] - v_ref[...] - mean_ref[...]) * inv_ref[...]


def get_normalized_advantages(returns, value_preds, *, tile_rows=1024):
    """returns / value_preds: [T+1, N, 1] -> normalized advantages [T, N, 1]."""
    t, n = returns.shape[0] - 1, returns.shape[1]
    m = t * n
    r = returns[:-1].reshape(-1).astype(jnp.float32)
    v = value_preds[:-1].reshape(-1).astype(jnp.float32)

    rows_needed = pl.cdiv(m, _LANE)
    tr = max(8, min(_round_up(rows_needed, 8), (tile_rows // 8) * 8))
    rows = _round_up(rows_needed, tr)
    p = rows * _LANE
    r2 = jnp.pad(r, (0, p - m)).reshape(rows, _LANE)
    v2 = jnp.pad(v, (0, p - m)).reshape(rows, _LANE)
    n_tiles = rows // tr

    tile_spec = pl.BlockSpec((tr, _LANE), lambda i: (i, 0))
    stat_spec = pl.BlockSpec((1, _LANE), lambda i: (0, 0))

    mean_b, inv_b = pl.pallas_call(
        functools.partial(_adv_stats_kernel, num_valid=m),
        out_shape=(jax.ShapeDtypeStruct((1, _LANE), jnp.float32),
                   jax.ShapeDtypeStruct((1, _LANE), jnp.float32)),
        grid_spec=pltpu.PrefetchScalarGridSpec(
            num_scalar_prefetch=0,
            grid=(n_tiles,),
            in_specs=[tile_spec, tile_spec],
            out_specs=[stat_spec, stat_spec],
            scratch_shapes=[pltpu.VMEM((1, _LANE), jnp.float32),
                            pltpu.VMEM((1, _LANE), jnp.float32)]),
        compiler_params=pltpu.CompilerParams(
            dimension_semantics=("arbitrary",),
            vmem_limit_bytes=_vmem_limit()),
    )(r2, v2)

    out = pl.pallas_call(
        _adv_norm_kernel,
        out_shape=jax.ShapeDtypeStruct((rows, _LANE), jnp.float32),
        grid_spec=pltpu.PrefetchScalarGridSpec(
            num_scalar_prefetch=0,
            grid=(n_tiles,),
            in_specs=[tile_spec, tile_spec, stat_spec, stat_spec],
            out_specs=tile_spec),
        compiler_params=pltpu.CompilerParams(
            dimension_semantics=("parallel",),
            vmem_limit_bytes=_vmem_limit()),
    )(r2, v2, mean_b, inv_b)
    return out.reshape(-1)[:m].reshape(t, n, 1)


# -----------------------------------------------------------------------------
# Fused kernel: evaluate_actions (combined policy+value head, categorical
# distribution) + PPO clipped-surrogate / clipped-value losses.
# Transposed layout: batch on lanes, action rows on sublanes.  Grid is
# (2 cores "parallel", batch tiles "arbitrary"); each core accumulates its
# partial sums and writes one lane-dense (1,128) row of the (2,128) output.
# -----------------------------------------------------------------------------
def _make_fused_eval_loss_kernel(*, num_actions, batch_size, tiles_per_core,
                                 clip_param, need_mask):
    def kernel(obs_ref, w_ref, aux_ref, out_ref, acc_ref):
        c = pl.program_id(0)          # TensorCore split ("parallel")
        j = pl.program_id(1)          # batch tiles per core ("arbitrary")

        @pl.when(j == 0)
        def _init():
            acc_ref[...] = jnp.zeros_like(acc_ref)

        # One MXU pass: rows [0, A) = policy logits, row A = value.
        # Bias is folded in via the constant-ones row appended to obs.
        raw = jnp.dot(w_ref[...], obs_ref[...],
                      preferred_element_type=jnp.float32)   # [Apad, TB] f32
        apad, tb = raw.shape
        row = jax.lax.broadcasted_iota(jnp.int32, (apad, tb), 0)
        is_pi = row < num_actions
        is_v = row == num_actions

        values = jnp.sum(jnp.where(is_v, raw, 0.0), axis=0, keepdims=True)

        # masked, numerically-stable softmax over the real action rows only
        logits = jnp.where(is_pi, raw, -1e30)
        mx = jnp.max(logits, axis=0, keepdims=True)          # [1, TB]
        ex = jnp.exp(logits - mx)
        z = jnp.sum(ex, axis=0, keepdims=True)
        logp = logits - mx - jnp.log(z)
        p = ex / z

        # lane-dense per-sample side inputs (single [8, TB] block)
        old_lp = aux_ref[0:1, :]
        adv = aux_ref[1:2, :]
        vpred = aux_ref[2:3, :]
        ret = aux_ref[3:4, :]
        act = aux_ref[4:5, :].astype(jnp.int32)              # [1, TB]

        onehot = row == act                                  # [Apad, TB]
        alp = jnp.sum(jnp.where(onehot, logp, 0.0), axis=0, keepdims=True)
        ent = -jnp.sum(jnp.where(is_pi, p * logp, 0.0), axis=0, keepdims=True)

        # --- PPO clipped surrogate + clipped value loss, all [1, TB] ---
        ratio = jnp.exp(alp - old_lp)
        surr1 = ratio * adv
        surr2 = jnp.clip(ratio, 1.0 - clip_param, 1.0 + clip_param) * adv
        surr_min = jnp.minimum(surr1, surr2)

        vpred_clipped = vpred + jnp.clip(values - vpred, -clip_param, clip_param)
        v_max = jnp.maximum((values - ret) ** 2, (vpred_clipped - ret) ** 2)

        if need_mask:  # compile-time: only emitted when the batch is padded
            pos = jax.lax.broadcasted_iota(jnp.int32, (1, tb), 1)
            gidx = (c * tiles_per_core + j) * tb + pos
            valid = (gidx < batch_size).astype(jnp.float32)
            v_max = v_max * valid
            surr_min = surr_min * valid
            ent = ent * valid

        s_v = jnp.sum(v_max, keepdims=True)                  # (1, 1)
        s_a = jnp.sum(surr_min, keepdims=True)
        s_e = jnp.sum(ent, keepdims=True)

        lane = jax.lax.broadcasted_iota(jnp.int32, (1, _LANE), 1)
        acc_ref[...] += (jnp.where(lane == 0, s_v, 0.0)
                         + jnp.where(lane == 1, s_a, 0.0)
                         + jnp.where(lane == 2, s_e, 0.0))

        @pl.when(j == pl.num_programs(1) - 1)
        def _finalize():
            # per-core partial losses, lane-dense:
            #   lane0 = 0.5*sum(v_max)/B, lane1 = -sum(surr_min)/B, lane2 = sum(ent)/B
            scale = 1.0 / batch_size
            coef = (jnp.where(lane == 0, 0.5 * scale, 0.0)
                    + jnp.where(lane == 1, -scale, 0.0)
                    + jnp.where(lane == 2, scale, 0.0))
            out_ref[...] = coef * acc_ref[...]

    return kernel


def ppo_update_losses(obs, w_pi, b_pi, w_v, b_v, actions, old_lp, adv, vpred,
                      ret, *, clip_param, value_loss_coef, entropy_coef,
                      tile_b=1024):
    """Fused evaluate_actions + PPO losses.

    Returns (value_loss, action_loss, dist_entropy, total_loss) scalars.
    """
    b, d = obs.shape
    a = w_pi.shape[1]
    apad = _round_up(a + 1, _LANE)       # policy rows + value row, 128-padded
    d_aug = _round_up(d + 1, 16)         # obs features + bias(ones) row

    # combined transposed head [Apad, D_aug]: rows 0..A-1 policy, row A value,
    # column D carries the biases (multiplied by the ones row of obs).
    w_t = jnp.zeros((apad, d_aug), jnp.float32)
    w_t = w_t.at[:a, :d].set(w_pi.T)
    w_t = w_t.at[a, :d].set(w_v[:, 0])
    w_t = w_t.at[:a, d].set(b_pi[0])
    w_t = w_t.at[a, d].set(b_v[0, 0])
    w_t = w_t.astype(jnp.bfloat16)       # bf16 MXU inputs, f32 accumulation

    # batch tiling on the lane axis; split across 2 cores (v7x megacore)
    tile_b = max(_LANE, (min(tile_b, _round_up(b, _LANE)) // _LANE) * _LANE)
    n_tiles = pl.cdiv(b, tile_b)
    n_half = pl.cdiv(n_tiles, 2)
    b_pad = 2 * n_half * tile_b

    # transposed, bias-row-augmented observations [D_aug, B_pad] (bf16)
    obs_t = jnp.zeros((d_aug, b_pad), jnp.float32)
    obs_t = obs_t.at[:d, :b].set(obs.T)
    obs_t = obs_t.at[d, :b].set(1.0)
    obs_t = obs_t.astype(jnp.bfloat16)

    # lane-dense side input [8, B_pad]: old_lp / adv / vpred / ret / action
    aux_t = jnp.zeros((8, b_pad), jnp.float32)
    aux_t = aux_t.at[0, :b].set(old_lp[:, 0])
    aux_t = aux_t.at[1, :b].set(adv[:, 0])
    aux_t = aux_t.at[2, :b].set(vpred[:, 0])
    aux_t = aux_t.at[3, :b].set(ret[:, 0])
    aux_t = aux_t.at[4, :b].set(actions[:, 0].astype(jnp.float32))

    kernel = _make_fused_eval_loss_kernel(
        num_actions=a, batch_size=b, tiles_per_core=n_half,
        clip_param=clip_param, need_mask=(b_pad != b))

    out = pl.pallas_call(
        kernel,
        out_shape=jax.ShapeDtypeStruct((2, _LANE), jnp.float32),
        grid_spec=pltpu.PrefetchScalarGridSpec(
            num_scalar_prefetch=0,
            grid=(2, n_half),
            in_specs=[
                pl.BlockSpec((d_aug, tile_b), lambda c, j: (0, c * n_half + j)),
                pl.BlockSpec((apad, d_aug), lambda c, j: (0, 0)),
                pl.BlockSpec((8, tile_b), lambda c, j: (0, c * n_half + j)),
            ],
            out_specs=pl.BlockSpec((1, _LANE), lambda c, j: (c, 0)),
            scratch_shapes=[pltpu.VMEM((1, _LANE), jnp.float32)]),
        compiler_params=pltpu.CompilerParams(
            dimension_semantics=("parallel", "arbitrary"),
            vmem_limit_bytes=_vmem_limit()),
    )(obs_t, w_t, aux_t)

    parts = jnp.sum(out, axis=0)              # sum the two per-core partial rows
    value_loss = parts[0]
    action_loss = parts[1]
    dist_entropy = parts[2]
    total = (value_loss * value_loss_coef + action_loss
             - dist_entropy * entropy_coef)
    return value_loss, action_loss, dist_entropy, total


# -----------------------------------------------------------------------------
# Pure-JAX references for sanity checking
# -----------------------------------------------------------------------------
def _ref_advantages(returns, value_preds):
    adv = (returns[:-1] - value_preds[:-1]).astype(jnp.float32)
    mean = adv.mean()
    std = jnp.sqrt(((adv - mean) ** 2).sum() / max(adv.size - 1, 1))
    return (adv - mean) / (std + EPS_PPO)


def _ref_losses(obs, w_pi, b_pi, w_v, b_v, actions, old_lp, adv, vpred, ret,
                clip_param, vc, ec):
    obs_bf = obs.astype(jnp.bfloat16)  # same bf16 MXU inputs as the kernel
    logits = (jnp.dot(obs_bf, w_pi.astype(jnp.bfloat16),
                      preferred_element_type=jnp.float32)
              + b_pi.astype(jnp.bfloat16).astype(jnp.float32))
    values = (jnp.dot(obs_bf, w_v.astype(jnp.bfloat16),
                      preferred_element_type=jnp.float32)
              + b_v.astype(jnp.bfloat16).astype(jnp.float32))
    logp = jax.nn.log_softmax(logits, axis=-1)
    p = jnp.exp(logp)
    alp = jnp.take_along_axis(logp, actions, axis=-1)
    ent = -(p * logp).sum(-1, keepdims=True)
    ratio = jnp.exp(alp - old_lp)
    surr1 = ratio * adv
    surr2 = jnp.clip(ratio, 1 - clip_param, 1 + clip_param) * adv
    action_loss = -jnp.minimum(surr1, surr2).mean()
    vpc = vpred + jnp.clip(values - vpred, -clip_param, clip_param)
    value_loss = 0.5 * jnp.maximum((values - ret) ** 2, (vpc - ret) ** 2).mean()
    de = ent.mean()
    total = value_loss * vc + action_loss - de * ec
    return value_loss, action_loss, de, total


# -----------------------------------------------------------------------------
if __name__ == "__main__":
    key = jax.random.PRNGKey(0)
    ks = jax.random.split(key, 10)

    # rollout-shaped data: [T+1, N, 1]
    T, N = 64, 10
    B = T * N                    # mini-batch of 640 (num_mini_batch = 1)
    D, A = 32, 8                 # obs features, discrete actions

    clip_param, value_loss_coef, entropy_coef = 0.2, 0.5, 0.01

    returns = jax.random.normal(ks[0], (T + 1, N, 1), jnp.float32)
    value_preds_roll = jax.random.normal(ks[1], (T + 1, N, 1), jnp.float32)

    # deterministic "actor_critic" parameters (linear policy + value heads)
    w_pi = 0.1 * jax.random.normal(ks[2], (D, A), jnp.float32)
    b_pi = 0.1 * jax.random.normal(ks[3], (1, A), jnp.float32)
    w_v = 0.1 * jax.random.normal(ks[4], (D, 1), jnp.float32)
    b_v = 0.1 * jax.random.normal(ks[5], (1, 1), jnp.float32)

    obs = jax.random.normal(ks[6], (B, D), jnp.float32)
    actions = jax.random.randint(ks[7], (B, 1), 0, A, jnp.int32)
    old_action_log_probs = -jnp.abs(jax.random.normal(ks[8], (B, 1), jnp.float32))

    # --- Kernel A: normalized advantages (gridded stats + normalize passes) ---
    advantages = get_normalized_advantages(returns, value_preds_roll)
    jax.block_until_ready(advantages)
    adv_ref = _ref_advantages(returns, value_preds_roll)
    assert jnp.allclose(advantages, adv_ref, atol=2e-4), "advantage mismatch"

    # flatten mini-batch views [T, N, 1] -> [B, 1]
    adv_b = advantages.reshape(B, 1)
    vpred_b = value_preds_roll[:-1].reshape(B, 1)
    ret_b = returns[:-1].reshape(B, 1)

    # --- Fused evaluate_actions + PPO losses --------------------------------
    # tile_b=256 with B=640 -> grid (2 cores, 2 tiles/core) with masked padding.
    vloss, aloss, dent, total = ppo_update_losses(
        obs, w_pi, b_pi, w_v, b_v, actions, old_action_log_probs,
        adv_b, vpred_b, ret_b,
        clip_param=clip_param, value_loss_coef=value_loss_coef,
        entropy_coef=entropy_coef, tile_b=256)
    jax.block_until_ready(total)

    rv, ra, re, rt = _ref_losses(obs, w_pi, b_pi, w_v, b_v, actions,
                                 old_action_log_probs, adv_b, vpred_b, ret_b,
                                 clip_param, value_loss_coef, entropy_coef)
    assert jnp.allclose(vloss, rv, atol=1e-3), "value_loss mismatch"
    assert jnp.allclose(aloss, ra, atol=1e-3), "action_loss mismatch"
    assert jnp.allclose(dent, re, atol=1e-3), "entropy mismatch"
    assert jnp.allclose(total, rt, atol=1e-3), "total_loss mismatch"

    # TODO(synk): total_loss.backward(), Adam optimizer.step(), and
    # nn.utils.clip_grad_norm_ have no in-kernel Pallas equivalent here.

    print("KERNEL_OK")
</pallas_src>

<mosaic_0001>
module attributes {stable_mosaic.version = 11 : i64} {
  func.func @_adv_stats_kernel(%arg0: i32, %arg1: memref<8x128xf32, #tpu.memory_space<vmem>>, %arg2: memref<8x128xf32, #tpu.memory_space<vmem>>, %arg3: memref<1x128xf32, #tpu.memory_space<vmem>>, %arg4: memref<1x128xf32, #tpu.memory_space<vmem>>, %arg5: memref<1x128xf32, #tpu.memory_space<vmem>>, %arg6: memref<1x128xf32, #tpu.memory_space<vmem>>) attributes {dimension_semantics = [#tpu.dimension_semantics<arbitrary>], iteration_bounds = array<i64: 1>, scalar_prefetch = 0 : i64, scratch_operands = 2 : i64, tpu.core_type = #tpu.core_type<tc>, window_params = [{transform_indices = @transform_0, window_bounds = array<i64: 8, 128>}, {transform_indices = @transform_1, window_bounds = array<i64: 8, 128>}, {pipeline_mode = #tpu.pipeline_mode<synchronous>, transform_indices = @transform_2, window_bounds = array<i64: 1, 128>}, {pipeline_mode = #tpu.pipeline_mode<synchronous>, transform_indices = @transform_3, window_bounds = array<i64: 1, 128>}]} {
    %c0_i32 = arith.constant 0 : i32
    %0 = arith.cmpi eq, %arg0, %c0_i32 : i32
    %1 = arith.extui %0 : i1 to i32
    %c0_i32_0 = arith.constant 0 : i32
    %2 = arith.cmpi ne, %1, %c0_i32_0 : i32
    scf.if %2 {
      %cst_15 = arith.constant 0.000000e+00 : f32
      %20 = vector.broadcast %cst_15 : f32 to vector<1x128xf32>
      %c0_16 = arith.constant 0 : index
      %c0_17 = arith.constant 0 : index
      %21 = vector.load %arg5[%c0_16, %c0_17] : memref<1x128xf32, #tpu.memory_space<vmem>>, vector<1x128xf32>
      tpu.vector_store %arg5[%c0_16, %c0_17], %20 {strides = array<i32>} : memref<1x128xf32, #tpu.memory_space<vmem>>, vector<1x128xf32>,
      %cst_18 = arith.constant 0.000000e+00 : f32
      %22 = vector.broadcast %cst_18 : f32 to vector<1x128xf32>
      %c0_19 = arith.constant 0 : index
      %c0_20 = arith.constant 0 : index
      %23 = vector.load %arg6[%c0_19, %c0_20] : memref<1x128xf32, #tpu.memory_space<vmem>>, vector<1x128xf32>
      tpu.vector_store %arg6[%c0_19, %c0_20], %22 {strides = array<i32>} : memref<1x128xf32, #tpu.memory_space<vmem>>, vector<1x128xf32>,
    } else {
    }
    %c0 = arith.constant 0 : index
    %c0_1 = arith.constant 0 : index
    %3 = vector.load %arg1[%c0, %c0_1] : memref<8x128xf32, #tpu.memory_space<vmem>>, vector<8x128xf32>
    %c0_2 = arith.constant 0 : index
    %c0_3 = arith.constant 0 : index
    %4 = vector.load %arg2[%c0_2, %c0_3] : memref<8x128xf32, #tpu.memory_space<vmem>>, vector<8x128xf32>
    %5 = arith.subf %3, %4 : vector<8x128xf32>
    %c0_4 = arith.constant 0 : index
    %c0_5 = arith.constant 0 : index
    %6 = vector.load %arg5[%c0_4, %c0_5] : memref<1x128xf32, #tpu.memory_space<vmem>>, vector<1x128xf32>
    %cst = arith.constant dense<0.000000e+00> : vector<128xf32>
    %7 = vector.multi_reduction <add>, %5, %cst [0] : vector<8x128xf32> to vector<128xf32>
    %8 = vector.shape_cast %7 : vector<128xf32> to vector<1x128xf32>
    %9 = arith.addf %6, %8 : vector<1x128xf32>
    %c0_6 = arith.constant 0 : index
    %c0_7 = arith.constant 0 : index
    %10 = vector.load %arg5[%c0_6, %c0_7] : memref<1x128xf32, #tpu.memory_space<vmem>>, vector<1x128xf32>
    tpu.vector_store %arg5[%c0_6, %c0_7], %9 {strides = array<i32>} : memref<1x128xf32, #tpu.memory_space<vmem>>, vector<1x128xf32>,
    %c0_8 = arith.constant 0 : index
    %c0_9 = arith.constant 0 : index
    %11 = vector.load %arg6[%c0_8, %c0_9] : memref<1x128xf32, #tpu.memory_space<vmem>>, vector<1x128xf32>
    %12 = arith.mulf %5, %5 : vector<8x128xf32>
    %cst_10 = arith.constant dense<0.000000e+00> : vector<128xf32>
    %13 = vector.multi_reduction <add>, %12, %cst_10 [0] : vector<8x128xf32> to vector<128xf32>
    %14 = vector.shape_cast %13 : vector<128xf32> to vector<1x128xf32>
    %15 = arith.addf %11, %14 : vector<1x128xf32>
    %c0_11 = arith.constant 0 : index
    %c0_12 = arith.constant 0 : index
    %16 = vector.load %arg6[%c0_11, %c0_12] : memref<1x128xf32, #tpu.memory_space<vmem>>, vector<1x128xf32>
    tpu.vector_store %arg6[%c0_11, %c0_12], %15 {strides = array<i32>} : memref<1x128xf32, #tpu.memory_space<vmem>>, vector<1x128xf32>,
    %c0_i32_13 = arith.constant 0 : i32
    %17 = arith.cmpi eq, %arg0, %c0_i32_13 : i32
    %18 = arith.extui %17 : i1 to i32
    %c0_i32_14 = arith.constant 0 : i32
    %19 = arith.cmpi ne, %18, %c0_i32_14 : i32
    scf.if %19 {
      %c0_15 = arith.constant 0 : index
      %c0_16 = arith.constant 0 : index
      %20 = vector.load %arg5[%c0_15, %c0_16] : memref<1x128xf32, #tpu.memory_space<vmem>>, vector<1x128xf32>
      %21 = vector.shape_cast %20 : vector<1x128xf32> to vector<1x1x128xf32>
      %cst_17 = arith.constant dense<0.000000e+00> : vector<1xf32>
      %22 = vector.multi_reduction <add>, %21, %cst_17 [1, 2] : vector<1x1x128xf32> to vector<1xf32>
      %23 = vector.shape_cast %22 : vector<1xf32> to vector<1x1x1xf32>
      %24 = vector.extract %23[0, 0, 0] : f32 from vector<1x1x1xf32>
      %25 = vector.broadcast %24 : f32 to vector<1x1xf32>
      %c0_18 = arith.constant 0 : index
      %c0_19 = arith.constant 0 : index
      %26 = vector.load %arg6[%c0_18, %c0_19] : memref<1x128xf32, #tpu.memory_space<vmem>>, vector<1x128xf32>
      %27 = vector.shape_cast %26 : vector<1x128xf32> to vector<1x1x128xf32>
      %cst_20 = arith.constant dense<0.000000e+00> : vector<1xf32>
      %28 = vector.multi_reduction <add>, %27, %cst_20 [1, 2] : vector<1x1x128xf32> to vector<1xf32>
      %29 = vector.shape_cast %28 : vector<1xf32> to vector<1x1x1xf32>
      %30 = vector.extract %29[0, 0, 0] : f32 from vector<1x1x1xf32>
      %31 = vector.broadcast %30 : f32 to vector<1x1xf32>
      %cst_21 = arith.constant 6.400000e+02 : f32
      %32 = vector.broadcast %cst_21 : f32 to vector<1x1xf32>
      %33 = arith.divf %25, %32 : vector<1x1xf32>
      %cst_22 = arith.constant 6.400000e+02 : f32
      %34 = vector.broadcast %cst_22 : f32 to vector<1x1xf32>
      %35 = arith.mulf %34, %33 : vector<1x1xf32>
      %36 = arith.mulf %35, %33 : vector<1x1xf32>
      %37 = arith.subf %31, %36 : vector<1x1xf32>
      %cst_23 = arith.constant 6.390000e+02 : f32
      %38 = vector.broadcast %cst_23 : f32 to vector<1x1xf32>
      %39 = arith.divf %37, %38 : vector<1x1xf32>
      %cst_24 = arith.constant 0.000000e+00 : f32
      %40 = vector.broadcast %cst_24 : f32 to vector<1x1xf32>
      %41 = arith.maximumf %39, %40 : vector<1x1xf32>
      %42 = math.sqrt %41 : vector<1x1xf32>
      %cst_25 = arith.constant 9.99999974E-6 : f32
      %43 = vector.broadcast %cst_25 : f32 to vector<1x1xf32>
      %44 = arith.addf %42, %43 : vector<1x1xf32>
      %cst_26 = arith.constant 1.000000e+00 : f32
      %45 = vector.broadcast %cst_26 : f32 to vector<1x1xf32>
      %46 = arith.divf %45, %44 : vector<1x1xf32>
      %47 = vector.shape_cast %33 : vector<1x1xf32> to vector<1x1xf32>
      %48 = vector.broadcast %47 : vector<1x1xf32> to vector<1x128xf32>
      %c0_27 = arith.constant 0 : index
      %c0_28 = arith.constant 0 : index
      %49 = vector.load %arg3[%c0_27, %c0_28] : memref<1x128xf32, #tpu.memory_space<vmem>>, vector<1x128xf32>
      tpu.vector_store %arg3[%c0_27, %c0_28], %48 {strides = array<i32>} : memref<1x128xf32, #tpu.memory_space<vmem>>, vector<1x128xf32>,
      %50 = vector.shape_cast %46 : vector<1x1xf32> to vector<1x1xf32>
      %51 = vector.broadcast %50 : vector<1x1xf32> to vector<1x128xf32>
      %c0_29 = arith.constant 0 : index
      %c0_30 = arith.constant 0 : index
      %52 = vector.load %arg4[%c0_29, %c0_30] : memref<1x128xf32, #tpu.memory_space<vmem>>, vector<1x128xf32>
      tpu.vector_store %arg4[%c0_29, %c0_30], %51 {strides = array<i32>} : memref<1x128xf32, #tpu.memory_space<vmem>>, vector<1x128xf32>,
    } else {
    }
    return
  }
  func.func @transform_0(%arg0: i32) -> (i32, i32) {
    %c0_i32 = arith.constant 0 : i32
    %c0_i32_0 = arith.constant 0 : i32
    return %arg0, %c0_i32 : i32, i32
  }
  func.func @transform_1(%arg0: i32) -> (i32, i32) {
    %c0_i32 = arith.constant 0 : i32
    %c0_i32_0 = arith.constant 0 : i32
    return %arg0, %c0_i32 : i32, i32
  }
  func.func @transform_2(%arg0: i32) -> (i32, i32) {
    %c0_i32 = arith.constant 0 : i32
    %c0_i32_0 = arith.constant 0 : i32
    %c0_i32_1 = arith.constant 0 : i32
    return %c0_i32, %c0_i32_0 : i32, i32
  }
  func.func @transform_3(%arg0: i32) -> (i32, i32) {
    %c0_i32 = arith.constant 0 : i32
    %c0_i32_0 = arith.constant 0 : i32
    %c0_i32_1 = arith.constant 0 : i32
    return %c0_i32, %c0_i32_0 : i32, i32
  }
}

</mosaic_0001>

<bundles_post_ra>
// kernel: tpu_custom_call.1
= control target key start
LH: loop header
LB: loop body
LE: loop exit
PB: predicated region body
PF: predicated region fallthrough
CT: control target
= control target key end

     0   :  { %9 = vsyncpa [#allocation5], 0  ;;  %s283_s0 = inlined_call_operand.hbm [shape: f32[8,128], index: 0, kind: input, shape index: {}]   ;;  %s284_s1 = inlined_call_operand.hbm [shape: f32[8,128], index: 1, kind: input, shape index: {}]   ;;  %s285_s2 = inlined_call_operand.hbm [shape: f32[1,128], index: 2, kind: output, shape index: {0}]   ;;  %s286_s3 = inlined_call_operand.hbm [shape: f32[1,128], index: 3, kind: output, shape index: {1}]  }
   0x1   :  { %10 = vsyncpa [#allocation8], 0 }
   0x2   :  { %11 = vsyncpa [#allocation6], 0 }
   0x3   :  { %12 = vsyncpa [#allocation11], 0  ;;  %s246_s12 = smov [#allocation4]   ;;  %s247_s14 = smov [#allocation7]  }
   0x4   :  { %s19_s13 = sshll.u32 %s246_s12, 4  ;;  %s29_s15 = sshll.u32 %s247_s14, 4  ;;  %s20_s13 = int_to_ptr.vmem [resolvable:$true] %s19_s13  ;;  %s30_s15 = int_to_ptr.vmem [resolvable:$true] %s29_s15 }
   0x5   :  { %s166_s16 = scalar_lea.vmem %s20_s13, 128  ;;  %p171_p1 = scmp.lt.s32.totalorder %s20_s13, %s20_s13 }
   0x6   :  { %p167_p0 = scmp.ne.s32.totalorder %s20_s13, %s166_s16  ;;  %p172_p2 = scmp.lt.s32.totalorder %s166_s16, %s166_s16 }
   0x8   :  { %p173_p3 = por %p172_p2, %p171_p1 }
   0xa   :  { %p174_p4 = pnand %p173_p3, %p167_p0 }
   0xc   :  { %177 = shalt.err (!%p174_p4)
}
   0xd   :  { %22 = dma.hbm_to_vmem [thread:$0]  %s283_s0, 128, %s20_s13, [#allocation5]  }
   0xe   :  { %s186_s19 = scalar_lea.vmem %s30_s15, 128  ;;  %p191_p6 = scmp.lt.s32.totalorder %s30_s15, %s30_s15 }
   0xf   :  { %p187_p5 = scmp.ne.s32.totalorder %s30_s15, %s186_s19  ;;  %p192_p7 = scmp.lt.s32.totalorder %s186_s19, %s186_s19 }
  0x11   :  { %p193_p8 = por %p192_p7, %p191_p6 }
  0x13   :  { %p194_p9 = pnand %p193_p8, %p187_p5 }
  0x15   :  { %197 = shalt.err (!%p194_p9)
}
  0x16   :  { %32 = dma.hbm_to_vmem [thread:$0]  %s284_s1, 128, %s30_s15, [#allocation8]  }
  0x17   :  { %238 = dma.done.wait [#allocation5], 128  }
  0x18   :  { %239 = vsyncadd [#allocation5], 4294967168 }
  0x19   :  { %240 = dma.done.wait [#allocation8], 128  }
  0x1a   :  { %241 = vsyncadd [#allocation8], 4294967168  ;;  %v248_v0 = vmov 0.0   ;;  %v45_v1 = vld [vmem:[#allocation4] sm:$0xff]  ;;  %v46_v2 = vld [vmem:[#allocation7] sm:$0xff]  ;;  %vm71_vm0 = vcmask 1040384  }
  0x1b   :  { %43 = vst [vmem:[#allocation2] sm:$0x1] %v248_v0  ;;  %44 = vst [vmem:[#allocation3] sm:$0x1] %v248_v0  ;;  %v47_v3 = vsub.f32 %v45_v1, %v46_v2  ;;  %s249_s0 = smov [#allocation9]  }
  0x1c   :  { %s121_s1 = sshll.u32 %s249_s0, 4  ;;  %s122_s1 = int_to_ptr.vmem [resolvable:$true] %s121_s1 }
  0x1d   :  { %v49_v4 = vrot.slane %v47_v3, 4  ;;  %v58_v5 = vmul.f32 %v47_v3, %v47_v3  ;;  %s198_s24 = scalar_lea.vmem %s122_s1, 16  ;;  %s202_s25 = scalar_lea.vmem %s122_s1, 32 }
  0x1e   :  { %p199_p10 = scmp.ne.s32.totalorder %s122_s1, %s198_s24  ;;  %p203_p11 = scmp.lt.s32.totalorder %s122_s1, %s122_s1 }
  0x1f   :  { %v50_v6 = vadd.f32 %v49_v4, %v47_v3  ;;  %v59_v7 = vrot.slane %v58_v5, 4  ;;  %p204_p12 = scmp.lt.s32.totalorder %s202_s25, %s198_s24 }
  0x21   :  { %v51_v8 = vrot.slane %v50_v6, 2  ;;  %v60_v9 = vadd.f32 %v59_v7, %v58_v5  ;;  %p205_p13 = por %p204_p12, %p203_p11 }
  0x22   :  { %v48_v14 = vld [vmem:[#allocation2] sm:$0x1]  ;;  %v57_v17 = vld [vmem:[#allocation3] sm:$0x1] }
  0x23   :  { %v52_v10 = vadd.f32 %v51_v8, %v50_v6  ;;  %v61_v11 = vrot.slane %v60_v9, 2  ;;  %p206_p0 = pnand %p205_p13, %p199_p10 }
  0x25   :  { %v53_v12 = vrot.slane %v52_v10, 1  ;;  %v62_v13 = vadd.f32 %v61_v11, %v60_v9 }
  0x27   :  { %v54_v15 = vadd.f32 %v53_v12, %v52_v10  ;;  %v63_v16 = vrot.slane %v62_v13, 1 }
  0x29   :  { %v55_v18 = vadd.f32 %v54_v15, %v48_v14  ;;  %v64_v19 = vadd.f32 %v63_v16, %v62_v13 }
  0x2b   :  { %56 = vst [vmem:[#allocation2] sm:$0x1] %v55_v18  ;;  %v65_v20 = vadd.f32 %v64_v19, %v57_v17 }
  0x2d   :  { %66 = vst [vmem:[#allocation3] sm:$0x1] %v65_v20 }
  0x32   :  { %v70_v21 = vld [vmem:[#allocation2] sm:$0x1] }
  0x33   :  { %v72_v22 = vsel %vm71_vm0, %v70_v21, 0.0 }
  0x34   :  { %73 = vadd.xlane.f32.xlu0 %v72_v22  ;;  %v83_v23 = vld [vmem:[#allocation3] sm:$0x1] }
  0x35   :  { %v84_v24 = vsel %vm71_vm0, %v83_v23, 0.0 }
  0x38   :  { %85 = vadd.xlane.f32.xlu0 %v84_v24 }
  0xbd   :  { %v74_v25 = vpop.xlane.xlu0 %73 }
  0xbe   :  { %v75_v26 = vrot.slane %v74_v25, 4 }
  0xc0   :  { %v76_v27 = vadd.f32 %v75_v26, %v74_v25 }
  0xc1   :  { %v86_v28 = vpop.xlane.xlu0 %85 }
  0xc2   :  { %v77_v29 = vrot.slane %v76_v27, 2  ;;  %v87_v30 = vrot.slane %v86_v28, 4 }
  0xc4   :  { %v88_v31 = vadd.f32 %v87_v30, %v86_v28  ;;  %v78_v32 = vadd.f32 %v77_v29, %v76_v27 }
  0xc6   :  { %v89_v33 = vrot.slane %v88_v31, 2  ;;  %v79_v34 = vrot.slane %v78_v32, 1 }
  0xc8   :  { %v90_v35 = vadd.f32 %v89_v33, %v88_v31  ;;  %v80_v36 = vadd.f32 %v79_v34, %v78_v32 }
  0xca   :  { %145 = vpush %v80_v36  ;;  %v91_v37 = vrot.slane %v90_v35, 1 }
  0xcc   :  { %v92_v38 = vadd.f32 %v91_v37, %v90_v35 }
  0xce   :  { %147 = vpush %v92_v38 }
  0xfb   :  { %s146_s22 = spop %145 }
  0xfc   :  { %v82_v39 = vstv %s146_s22 }
  0xfd   :  { %v96_v40 = vmul.f32 0.0015625, %v82_v39 }
  0xff   :  { %113 = vst [vmem:[#allocation9] sm:$0x1] %v96_v40  ;;  %s148_s23 = spop %147  ;;  %v97_v41 = vmul.f32 640.0, %v96_v40 }
 0x100   :  { %209 = shalt.err (!%p206_p0)
}
 0x101   :  { %124 = dma.vmem_to_hbm [thread:$0]  %s122_s1, 16, %s285_s2, [#allocation6]   ;;  %v98_v42 = vmul.f32 %v97_v41, %v96_v40  ;;  %v94_v43 = vstv %s148_s23 }
 0x102   :  { %s250_s28 = smov [#allocation10]  }
 0x103   :  { %v99_v44 = vsub.f32 %v94_v43, %v98_v42  ;;  %s131_s29 = sshll.u32 %s250_s28, 4  ;;  %s132_s29 = int_to_ptr.vmem [resolvable:$true] %s131_s29 }
 0x104   :  { %s218_s2 = scalar_lea.vmem %s132_s29, 16  ;;  %s222_s30 = scalar_lea.vmem %s132_s29, 32 }
 0x105   :  { %v101_v45 = vmul.f32 0.0015649452, %v99_v44  ;;  %p219_p1 = scmp.ne.s32.totalorder %s132_s29, %s218_s2  ;;  %p223_p2 = scmp.lt.s32.totalorder %s132_s29, %s132_s29 }
 0x106   :  { %p224_p3 = scmp.lt.s32.totalorder %s222_s30, %s218_s2 }
 0x107   :  { %v102_v46 = vmax.f32 %v101_v45, 0.0 }
 0x108   :  { %p225_p4 = por %p224_p3, %p223_p2 }
 0x109   :  { %154 = vrsqrt.f32 %v102_v46  ;;  %vm105_vm1 = vcmp.eq.f32.partialorder %v102_v46, inf  ;;  %v108_v49 = vand.u32 2147483648, %v102_v46  ;;  %vm107_vm2 = vcmp.eq.f32.partialorder %v102_v46, 0.0 }
 0x10a   :  { %p226_p5 = pnand %p225_p4, %p219_p1 }
 0x116   :  { %v155_v47 = vpop.eup %154 }
 0x117   :  { %v104_v48 = vmul.f32 %v155_v47, %v102_v46 }
 0x119   :  { %v106_v50 = vsel %vm105_vm1, %v102_v46, %v104_v48 }
 0x11a   :  { %v109_v51 = vsel %vm107_vm2, %v108_v49, %v106_v50 }
 0x11b   :  { %v110_v52 = vadd.f32 1e-05, %v109_v51 }
 0x11d   :  { %156 = vrcp.f32 %v110_v52 }
 0x12a   :  { %v157_v53 = vpop.eup %156 }
 0x12b   :  { %114 = vst [vmem:[#allocation10] sm:$0x1] %v157_v53 }
 0x12c   :  { %229 = shalt.err (!%p226_p5)
}
 0x12d   :  { %134 = dma.vmem_to_hbm [thread:$0]  %s132_s29, 16, %s286_s3, [#allocation11]  }
 0x12e   :  { %242 = dma.done.wait [#allocation6], 16  }
 0x12f   :  { %243 = vsyncadd [#allocation6], 4294967280 }
 0x130   :  { %244 = dma.done.wait [#allocation11], 16  }
 0x131   :  { %245 = vsyncadd [#allocation11], 4294967280 }
 0x132   :  { %141 = vsyncpa [#allocation5], 1 }
 0x133   :  { %142 = vsyncpa [#allocation8], 1 }
 0x134   :  { %143 = vsyncpa [#allocation6], 1 }
 0x135   :  { %144 = vsyncpa [#allocation11], 1 }

</bundles_post_ra>
